<compile_context>
chip_gen: v6e
topology: v6e:2x2x1
jax: 0.10.0
libtpu: 0.0.40
codegen_flags: <defaults>
</compile_context>

<pallas_src>
import functools

import jax
import jax.numpy as jnp
from jax.experimental import pallas as pl
from jax.experimental.pallas import tpu as pltpu


# ---------------------------------------------------------------------------
# Pass 1: tiled spatial-sum (global average pool numerator), f32 accumulator.
# ---------------------------------------------------------------------------
def _pool_sum_kernel(x_ref, sum_ref, *, hw, tile_t, tiles_per_group, needs_mask):
    # x_ref:   (R, T)   rows = flattened (n, c_in), lanes = spatial tile
    # sum_ref: (R, 1)   f32 partial sum, resident across the HW grid axis
    p = pl.program_id(0)          # partial-sum group (v7x parallelism)
    t = pl.program_id(2)          # spatial tile within the group (reduction)

    @pl.when(t == 0)
    def _():
        sum_ref[...] = jnp.zeros_like(sum_ref)

    xv = x_ref[...].astype(jnp.float32)
    if needs_mask:
        # Global lane index of this tile; zero out padded / out-of-range lanes.
        start = (p * tiles_per_group + t) * tile_t
        lane = jax.lax.broadcasted_iota(jnp.int32, x_ref.shape, 1) + start
        xv = jnp.where(lane < hw, xv, 0.0)
    sum_ref[...] += jnp.sum(xv, axis=1, keepdims=True)


# ---------------------------------------------------------------------------
# Pass 2: nearest-upsample == lane-dense broadcast store.
# ---------------------------------------------------------------------------
def _broadcast_kernel(y_ref, o_ref):
    # y_ref: (R, 1)  context vector rows, already in the output dtype
    # o_ref: (R, T)  lane-dense output tile
    o_ref[...] = jnp.broadcast_to(y_ref[...], o_ref.shape)


def _choose_tiles(n_rows, hw, itemsize, target_block_bytes=2 << 20, max_row_block=256):
    """Pick (R, T): R = row block (full extent or multiple of 8), T = lane tile
    (multiple of 128) sized so one block is ~target_block_bytes."""
    if n_rows <= max_row_block:
        r = n_rows                       # full extent — always a legal block dim
    else:
        r = max_row_block                # multiple of 8
    lanes = target_block_bytes // max(1, r * itemsize)
    lanes = max(128, (lanes // 128) * 128)
    hw_ceil = ((hw + 127) // 128) * 128
    t = min(lanes, hw_ceil)
    return r, t


def context_embedding(x_nchw, w, gamma, beta, running_mean, running_var, eps=1e-5):
    """x_nchw: (N, C_in, H, W); w: (C_out, C_in, 1, 1) conv weight (no bias)."""
    N, C_in, H, W = x_nchw.shape
    C_out = w.shape[0]
    HW = H * W
    out_dtype = x_nchw.dtype

    # ---- Pass 1: global-average-pool (spatial sum), flattened rows ---------
    n_rows_in = N * C_in
    x2 = x_nchw.reshape(n_rows_in, HW)                       # zero-cost view

    R1, T1 = _choose_tiles(n_rows_in, HW, jnp.dtype(x_nchw.dtype).itemsize)
    n_row_tiles1 = pl.cdiv(n_rows_in, R1)
    n_hw_tiles1 = pl.cdiv(HW, T1)
    # Give v7x's two TensorCores work even at tiny batch: split the HW
    # reduction into P independent partial-sum groups on a 'parallel' axis.
    P = 2 if (n_row_tiles1 == 1 and n_hw_tiles1 >= 2) else 1
    tpg = pl.cdiv(n_hw_tiles1, P)
    needs_mask = (HW % T1 != 0) or (P * tpg != n_hw_tiles1)

    partials = pl.pallas_call(
        functools.partial(_pool_sum_kernel, hw=HW, tile_t=T1,
                          tiles_per_group=tpg, needs_mask=needs_mask),
        out_shape=jax.ShapeDtypeStruct((P, n_rows_in, 1), jnp.float32),
        grid_spec=pltpu.PrefetchScalarGridSpec(
            num_scalar_prefetch=0,
            grid=(P, n_row_tiles1, tpg),
            in_specs=[pl.BlockSpec((R1, T1), lambda p, r, t: (r, p * tpg + t))],
            out_specs=pl.BlockSpec((None, R1, 1), lambda p, r, t: (p, r, 0)),
        ),
        compiler_params=pltpu.CompilerParams(
            dimension_semantics=("parallel", "parallel", "arbitrary")),
    )(x2)

    # ---- Tiny conv(1x1) + folded BN + ReLU in plain JAX --------------------
    sums = jnp.sum(partials, axis=0)[:, 0].reshape(N, C_in)  # (N, C_in) f32
    pooled = sums * (1.0 / HW)
    scale = (gamma / jnp.sqrt(running_var + eps)).astype(jnp.float32)   # (C_out,)
    bias = (beta - running_mean * scale).astype(jnp.float32)            # (C_out,)
    w2d = w.reshape(C_out, C_in).astype(jnp.float32)
    w_scaled = (w2d * scale[:, None]).T                       # (C_in, C_out)
    y = jnp.maximum(pooled @ w_scaled + bias[None, :], 0.0)   # (N, C_out) f32
    # Pre-cast to the output dtype so Pass 2 is a pure broadcast store.
    y2 = y.astype(out_dtype).reshape(N * C_out, 1)

    # ---- Pass 2: lane-dense broadcast write (nearest upsample) -------------
    n_rows_out = N * C_out
    R2, T2 = _choose_tiles(n_rows_out, HW, jnp.dtype(out_dtype).itemsize)
    n_row_tiles2 = pl.cdiv(n_rows_out, R2)
    n_hw_tiles2 = pl.cdiv(HW, T2)

    out2 = pl.pallas_call(
        _broadcast_kernel,
        out_shape=jax.ShapeDtypeStruct((n_rows_out, HW), out_dtype),
        grid_spec=pltpu.PrefetchScalarGridSpec(
            num_scalar_prefetch=0,
            grid=(n_row_tiles2, n_hw_tiles2),
            in_specs=[pl.BlockSpec((R2, 1), lambda r, t: (r, 0))],
            out_specs=pl.BlockSpec((R2, T2), lambda r, t: (r, t)),
        ),
        compiler_params=pltpu.CompilerParams(
            dimension_semantics=("parallel", "parallel")),
    )(y2)

    # Zero-cost view back to NCHW.
    return out2.reshape(N, C_out, H, W)


def _reference(x_nchw, w, gamma, beta, running_mean, running_var, eps=1e-5):
    """Plain-JAX reference mirroring the PyTorch forward (eval mode)."""
    pooled = jnp.mean(x_nchw, axis=(2, 3))                    # (N, Cin)
    y = pooled @ w.reshape(w.shape[0], w.shape[1]).T          # (N, Cout)
    y = (y - running_mean) / jnp.sqrt(running_var + eps) * gamma + beta
    y = jnp.maximum(y, 0.0)
    N, Cout = y.shape
    H, W = x_nchw.shape[2:]
    return jnp.broadcast_to(y[:, :, None, None], (N, Cout, H, W))


if __name__ == "__main__":
    key = jax.random.PRNGKey(0)
    N, C_in, C_out, H, W = 2, 4, 8, 16, 16

    k_x, k_w, k_g, k_b, k_m, k_v = jax.random.split(key, 6)
    x = jax.random.normal(k_x, (N, C_in, H, W), dtype=jnp.float32)
    w = jax.random.normal(k_w, (C_out, C_in, 1, 1), dtype=jnp.float32) * 0.1
    gamma = 1.0 + 0.1 * jax.random.normal(k_g, (C_out,), dtype=jnp.float32)
    beta = 0.1 * jax.random.normal(k_b, (C_out,), dtype=jnp.float32)
    running_mean = 0.05 * jax.random.normal(k_m, (C_out,), dtype=jnp.float32)
    running_var = jnp.abs(1.0 + 0.1 * jax.random.normal(k_v, (C_out,), dtype=jnp.float32))

    out = context_embedding(x, w, gamma, beta, running_mean, running_var)
    out = jax.block_until_ready(out)

    ref = _reference(x, w, gamma, beta, running_mean, running_var)
    assert out.shape == (N, C_out, H, W)
    assert jnp.allclose(out, ref, atol=1e-5, rtol=1e-5), "mismatch vs reference"

    print("KERNEL_OK")
</pallas_src>

<mosaic_0001>
module attributes {stable_mosaic.version = 11 : i64} {
  func.func @_pool_sum_kernel(%arg0: i32, %arg1: i32, %arg2: i32, %arg3: memref<8x256xf32, #tpu.memory_space<vmem>>, %arg4: memref<1x8x1xf32, #tpu.memory_space<vmem>>) attributes {dimension_semantics = [#tpu.dimension_semantics<parallel>, #tpu.dimension_semantics<parallel>, #tpu.dimension_semantics<arbitrary>], iteration_bounds = array<i64: 1, 1, 1>, scalar_prefetch = 0 : i64, scratch_operands = 0 : i64, tpu.core_type = #tpu.core_type<tc>, window_params = [{transform_indices = @transform_0, window_bounds = array<i64: 8, 256>}, {transform_indices = @transform_1, window_bounds = array<i64: 1, 8, 1>}]} {
    %c0_i32 = arith.constant 0 : i32
    %0 = arith.cmpi eq, %arg2, %c0_i32 : i32
    %1 = arith.extui %0 : i1 to i32
    %c0_i32_0 = arith.constant 0 : i32
    %2 = arith.cmpi ne, %1, %c0_i32_0 : i32
    scf.if %2 {
      %cst_8 = arith.constant 0.000000e+00 : f32
      %12 = vector.broadcast %cst_8 : f32 to vector<8x1xf32>
      %c0_9 = arith.constant 0 : index
      %c0_10 = arith.constant 0 : index
      %c0_11 = arith.constant 0 : index
      %13 = vector.load %arg4[%c0_9, %c0_10, %c0_11] : memref<1x8x1xf32, #tpu.memory_space<vmem>>, vector<1x8x1xf32>
      %14 = vector.shape_cast %13 : vector<1x8x1xf32> to vector<8x1xf32>
      %15 = vector.shape_cast %12 : vector<8x1xf32> to vector<1x8x1xf32>
      tpu.vector_store %arg4[%c0_9, %c0_10, %c0_11], %15 {strides = array<i32>} : memref<1x8x1xf32, #tpu.memory_space<vmem>>, vector<1x8x1xf32>,
    } else {
    }
    %c0 = arith.constant 0 : index
    %c0_1 = arith.constant 0 : index
    %3 = vector.load %arg3[%c0, %c0_1] : memref<8x256xf32, #tpu.memory_space<vmem>>, vector<8x256xf32>
    %c0_2 = arith.constant 0 : index
    %c0_3 = arith.constant 0 : index
    %c0_4 = arith.constant 0 : index
    %4 = vector.load %arg4[%c0_2, %c0_3, %c0_4] : memref<1x8x1xf32, #tpu.memory_space<vmem>>, vector<1x8x1xf32>
    %5 = vector.shape_cast %4 : vector<1x8x1xf32> to vector<8x1xf32>
    %cst = arith.constant dense<0.000000e+00> : vector<8xf32>
    %6 = vector.multi_reduction <add>, %3, %cst [1] : vector<8x256xf32> to vector<8xf32>
    %7 = vector.shape_cast %6 : vector<8xf32> to vector<8x1xf32>
    %8 = arith.addf %5, %7 : vector<8x1xf32>
    %c0_5 = arith.constant 0 : index
    %c0_6 = arith.constant 0 : index
    %c0_7 = arith.constant 0 : index
    %9 = vector.load %arg4[%c0_5, %c0_6, %c0_7] : memref<1x8x1xf32, #tpu.memory_space<vmem>>, vector<1x8x1xf32>
    %10 = vector.shape_cast %9 : vector<1x8x1xf32> to vector<8x1xf32>
    %11 = vector.shape_cast %8 : vector<8x1xf32> to vector<1x8x1xf32>
    tpu.vector_store %arg4[%c0_5, %c0_6, %c0_7], %11 {strides = array<i32>} : memref<1x8x1xf32, #tpu.memory_space<vmem>>, vector<1x8x1xf32>,
    return
  }
  func.func @transform_0(%arg0: i32, %arg1: i32, %arg2: i32) -> (i32, i32) {
    %c1_i32 = arith.constant 1 : i32
    %0 = arith.muli %arg0, %c1_i32 : i32
    %1 = arith.addi %0, %arg2 : i32
    %c0_i32 = arith.constant 0 : i32
    return %arg1, %1 : i32, i32
  }
  func.func @transform_1(%arg0: i32, %arg1: i32, %arg2: i32) -> (i32, i32, i32) {
    %c0_i32 = arith.constant 0 : i32
    %c0_i32_0 = arith.constant 0 : i32
    return %arg0, %arg1, %c0_i32 : i32, i32, i32
  }
}

</mosaic_0001>

<bundles_post_ra>
// kernel: tpu_custom_call.1
= control target key start
LH: loop header
LB: loop body
LE: loop exit
PB: predicated region body
PF: predicated region fallthrough
CT: control target
= control target key end

     0   :  { %6 = vsyncpa [#allocation3], 0  ;;  %s70_s6 = smov [#allocation2]   ;;  %s94_s0 = inlined_call_operand.hbm [shape: f32[8,256], index: 0, kind: input, shape index: {}]   ;;  %s95_s1 = inlined_call_operand.vmem [shape: f32[1,8,1], index: 1, kind: output, shape index: {}]  }
   0x1   :  { %s17_s7 = sshll.u32 %s70_s6, 4  ;;  %s18_s7 = int_to_ptr.vmem [resolvable:$true] %s17_s7 }
   0x2   :  { %s56_s8 = scalar_lea.vmem %s18_s7, 256  ;;  %p61_p1 = scmp.lt.s32.totalorder %s18_s7, %s18_s7 }
   0x3   :  { %p57_p0 = scmp.ne.s32.totalorder %s18_s7, %s56_s8  ;;  %p62_p2 = scmp.lt.s32.totalorder %s56_s8, %s56_s8 }
   0x5   :  { %p63_p3 = por %p62_p2, %p61_p1 }
   0x7   :  { %p64_p4 = pnand %p63_p3, %p57_p0 }
   0x9   :  { %67 = shalt.err (!%p64_p4)
}
   0xa   :  { %20 = dma.hbm_to_vmem [thread:$0]  %s94_s0, 256, %s18_s7, [#allocation3]  }
   0xb   :  { %68 = dma.done.wait [#allocation3], 256  }
   0xc   :  { %69 = vsyncadd [#allocation3], 4294967040  ;;  %vm30_vm0 = vcmask 7168   ;;  %v71_v0 = vmov 0.0   ;;  %v32_v1 = vld [vmem:[#allocation2] sm:$0xff]  ;;  %v33_v2 = vld [vmem:[#allocation2 + $0x8] sm:$0xff] }
   0xd   :  { %31 = vst.msk [vmem:[%s95_s1] sm:$0xff] %vm30_vm0, %v71_v0  ;;  %v35_v3 = vadd.f32 %v33_v2, %v32_v1 }
   0xf   :  { %36 = vadd.xlane.f32.xlu0 %v35_v3 }
  0x14   :  { %v34_v4 = vld [vmem:[%s95_s1] sm:$0xff] }
  0x98   :  { %v37_v5 = vpop.xlane.xlu0 %36 }
  0x99   :  { %v38_v6 = vadd.f32 %v37_v5, %v34_v4 }
  0x9b   :  { %40 = vst.msk [vmem:[%s95_s1] sm:$0xff] %vm30_vm0, %v38_v6 }
  0x9c   :  { %45 = vsyncpa [#allocation3], 1 }

</bundles_post_ra>
